<compile_context>
chip_gen: v5e
topology: v5e:2x2
jax: 0.10.0
libtpu: 0.0.40
codegen_flags: <defaults>
</compile_context>

<pallas_src>
import jax
import jax.numpy as jnp
from jax.experimental import pallas as pl
from jax.experimental.pallas import tpu as pltpu


def _kernel_lr_kernel(x_ref, proto_ref, psqc_ref, w_ref, xsqc_ref, out_ref,
                      acc_ref):
    """Tiled kernel body.

    x_ref:     [TB, F]   input batch tile (resident across hidden steps)
    proto_ref: [F,  TH]  lane-major prototype tile, pre-scaled by 1/sigma^2
    psqc_ref:  [1,  TH]  -||p||^2 / (2 sigma^2) for the tile
    w_ref:     [1,  TH]  linear-readout weight row for the tile
    xsqc_ref:  [TB, 1]   -||x||^2 / (2 sigma^2) for the batch tile
    out_ref:   [TB, 1]   output tile (written on the last hidden step only)
    acc_ref:   [TB, 128] f32 lane-dense accumulator, resident across hidden axis
    """
    j = pl.program_id(1)

    @pl.when(j == 0)
    def _():
        acc_ref[...] = jnp.zeros_like(acc_ref)

    x = x_ref[...]                       # [TB, F]
    p = proto_ref[...]                   # [F, TH] (already scaled by 1/sigma^2)

    # Cross term on the MXU; RHS is already [K, N] and lane-dense, no transpose.
    xp = jnp.dot(x, p, preferred_element_type=jnp.float32)          # [TB, TH]

    # exponent = -||x - p||^2 / (2 s^2) = x.p/s^2 - ||x||^2/(2 s^2) - ||p||^2/(2 s^2)
    e = jnp.minimum(xp + xsqc_ref[...] + psqc_ref[...], 0.0)        # [TB, TH]
    kw = jnp.exp(e) * w_ref[...]                                    # [TB, TH]

    # Lane-dense accumulation: fold TH lanes down to 128 with VPU adds only
    # (static 128-aligned slices); defer the 128->1 XLU reduce to the last step.
    th = kw.shape[1]
    partial = kw[:, 0:128]
    for c in range(1, th // 128):
        partial = partial + kw[:, c * 128:(c + 1) * 128]
    acc_ref[...] += partial

    @pl.when(j == pl.num_programs(1) - 1)
    def _():
        out_ref[...] = jnp.sum(acc_ref[...], axis=-1,
                               keepdims=True).astype(out_ref.dtype)


def kernel_lr_forward(x, prototypes, weight, sigma, *, tb_max=256, th_max=2048):
    """Pallas wrapper.

    Args:
      x:          [batch, n_features] float32
      prototypes: [hidden_dim, n_features] float32
      weight:     [1, hidden_dim] float32 (same layout as torch nn.Linear(H,1).weight)
      sigma:      python float
    Returns:
      [batch, 1] float32
    """
    batch, n_features = x.shape
    hidden_dim, pf = prototypes.shape
    assert pf == n_features
    assert weight.shape == (1, hidden_dim)

    x = x.astype(jnp.float32)
    prototypes = prototypes.astype(jnp.float32)
    weight = weight.astype(jnp.float32)

    sigma = float(sigma)
    neg_inv_2sig2 = -1.0 / (2.0 * sigma * sigma)
    inv_sig2 = 1.0 / (sigma * sigma)

    # Wrapper-side precompute (tiny, once per call):
    #   p_fh  : [F, H] lane-major prototypes, pre-scaled so MXU emits x.p/sigma^2
    #   p_sqc : [1, H] = -||p||^2 / (2 sigma^2)
    #   x_sqc : [B, 1] = -||x||^2 / (2 sigma^2)  (hoisted out of the hidden loop)
    p_fh = prototypes.T * inv_sig2
    p_sqc = (jnp.sum(prototypes * prototypes, axis=-1) * neg_inv_2sig2)[None, :]
    x_sqc = jnp.sum(x * x, axis=-1, keepdims=True) * neg_inv_2sig2

    # Tile sizes: batch tile a multiple of 8, hidden tile a multiple of 128.
    rb = -(-batch // 8) * 8
    tb = min(rb, tb_max)
    rh = -(-hidden_dim // 128) * 128
    th = min(rh, th_max)

    batch_p = -(-batch // tb) * tb
    hidden_p = -(-hidden_dim // th) * th

    # Zero-padding is exact: padded hidden units have zero weight (contribute 0),
    # padded batch rows are sliced off below.
    if batch_p != batch:
        pad = batch_p - batch
        x = jnp.pad(x, ((0, pad), (0, 0)))
        x_sqc = jnp.pad(x_sqc, ((0, pad), (0, 0)))
    if hidden_p != hidden_dim:
        pad = hidden_p - hidden_dim
        p_fh = jnp.pad(p_fh, ((0, 0), (0, pad)))
        p_sqc = jnp.pad(p_sqc, ((0, 0), (0, pad)))
        weight = jnp.pad(weight, ((0, 0), (0, pad)))

    out = pl.pallas_call(
        _kernel_lr_kernel,
        out_shape=jax.ShapeDtypeStruct((batch_p, 1), jnp.float32),
        grid_spec=pltpu.PrefetchScalarGridSpec(
            num_scalar_prefetch=0,
            grid=(batch_p // tb, hidden_p // th),
            in_specs=[
                pl.BlockSpec((tb, n_features), lambda i, j: (i, 0)),   # x tile
                pl.BlockSpec((n_features, th), lambda i, j: (0, j)),   # prototypes [F,TH]
                pl.BlockSpec((1, th), lambda i, j: (0, j)),            # -||p||^2/(2s^2)
                pl.BlockSpec((1, th), lambda i, j: (0, j)),            # weight row
                pl.BlockSpec((tb, 1), lambda i, j: (i, 0)),            # -||x||^2/(2s^2)
            ],
            out_specs=pl.BlockSpec((tb, 1), lambda i, j: (i, 0)),
            scratch_shapes=[pltpu.VMEM((tb, 128), jnp.float32)],
        ),
        compiler_params=pltpu.CompilerParams(
            dimension_semantics=("parallel", "arbitrary"),
            vmem_limit_bytes=32 * 1024 * 1024),
    )(x, p_fh, p_sqc, weight, x_sqc)

    return out[:batch]


def kernel_lr_reference(x, prototypes, weight, sigma):
    """Pure-JAX reference mirroring the PyTorch forward exactly."""
    diff = x[:, None, :] - prototypes[None, :, :]            # [B, H, F]
    d2 = jnp.sum(diff * diff, axis=-1)                       # [B, H]
    k = jnp.exp(-d2 / (2.0 * sigma * sigma))                 # [B, H]
    return k @ weight.T                                      # [B, 1]


if __name__ == "__main__":
    key = jax.random.PRNGKey(0)
    k_x, k_proto, k_w = jax.random.split(key, 3)

    # Small shapes consistent with the module: hidden_dim == number of
    # training samples (prototypes), features = 32, batch = 8.
    batch = 8
    n_features = 32
    hidden_dim = 16
    sigma = 1.5

    x = jax.random.normal(k_x, (batch, n_features), dtype=jnp.float32)
    # Kernel_Layer(hidden_dim=None): prototypes are the training samples X.
    prototypes = jax.random.normal(k_proto, (hidden_dim, n_features),
                                   dtype=jnp.float32)
    # torch.nn.Linear(hidden_dim, 1, bias=False).weight has shape [1, hidden_dim].
    bound = hidden_dim ** -0.5
    weight = jax.random.uniform(k_w, (1, hidden_dim), dtype=jnp.float32,
                                minval=-bound, maxval=bound)

    out = kernel_lr_forward(x, prototypes, weight, sigma)
    out = jax.block_until_ready(out)

    ref = kernel_lr_reference(x, prototypes, weight, sigma)
    assert out.shape == (batch, 1)
    assert jnp.allclose(out, ref, atol=1e-5, rtol=1e-5), (out, ref)

    print("KERNEL_OK")
</pallas_src>

<mosaic_0001>
module attributes {stable_mosaic.version = 11 : i64} {
  func.func @_kernel_lr_kernel(%arg0: i32, %arg1: i32, %arg2: memref<8x32xf32, #tpu.memory_space<vmem>>, %arg3: memref<32x128xf32, #tpu.memory_space<vmem>>, %arg4: memref<1x128xf32, #tpu.memory_space<vmem>>, %arg5: memref<1x128xf32, #tpu.memory_space<vmem>>, %arg6: memref<8x1xf32, #tpu.memory_space<vmem>>, %arg7: memref<8x1xf32, #tpu.memory_space<vmem>>, %arg8: memref<8x128xf32, #tpu.memory_space<vmem>>) attributes {dimension_semantics = [#tpu.dimension_semantics<parallel>, #tpu.dimension_semantics<arbitrary>], iteration_bounds = array<i64: 1, 1>, scalar_prefetch = 0 : i64, scratch_operands = 1 : i64, tpu.core_type = #tpu.core_type<tc>, window_params = [{transform_indices = @transform_0, window_bounds = array<i64: 8, 32>}, {transform_indices = @transform_1, window_bounds = array<i64: 32, 128>}, {transform_indices = @transform_2, window_bounds = array<i64: 1, 128>}, {transform_indices = @transform_3, window_bounds = array<i64: 1, 128>}, {transform_indices = @transform_4, window_bounds = array<i64: 8, 1>}, {transform_indices = @transform_5, window_bounds = array<i64: 8, 1>}]} {
    %c0_i32 = arith.constant 0 : i32
    %0 = arith.cmpi eq, %arg1, %c0_i32 : i32
    %1 = arith.extui %0 : i1 to i32
    %c0_i32_0 = arith.constant 0 : i32
    %2 = arith.cmpi ne, %1, %c0_i32_0 : i32
    scf.if %2 {
      %cst_17 = arith.constant 0.000000e+00 : f32
      %24 = vector.broadcast %cst_17 : f32 to vector<8x128xf32>
      %c0_18 = arith.constant 0 : index
      %c0_19 = arith.constant 0 : index
      %25 = vector.load %arg8[%c0_18, %c0_19] : memref<8x128xf32, #tpu.memory_space<vmem>>, vector<8x128xf32>
      tpu.vector_store %arg8[%c0_18, %c0_19], %24 {strides = array<i32>} : memref<8x128xf32, #tpu.memory_space<vmem>>, vector<8x128xf32>,
    } else {
    }
    %c0 = arith.constant 0 : index
    %c0_1 = arith.constant 0 : index
    %3 = vector.load %arg2[%c0, %c0_1] : memref<8x32xf32, #tpu.memory_space<vmem>>, vector<8x32xf32>
    %c0_2 = arith.constant 0 : index
    %c0_3 = arith.constant 0 : index
    %4 = vector.load %arg3[%c0_2, %c0_3] : memref<32x128xf32, #tpu.memory_space<vmem>>, vector<32x128xf32>
    %cst = arith.constant dense<0.000000e+00> : vector<8x128xf32>
    %5 = tpu.matmul %3, %4, %cst {dimension_numbers = #tpu.dot_dimension_numbers<[1], [0], [0], [1], [0, 0, 1, 1], [], []>} : vector<8x32xf32>, vector<32x128xf32>, vector<8x128xf32> -> vector<8x128xf32>
    %c0_4 = arith.constant 0 : index
    %c0_5 = arith.constant 0 : index
    %6 = vector.load %arg6[%c0_4, %c0_5] : memref<8x1xf32, #tpu.memory_space<vmem>>, vector<8x1xf32>
    %7 = vector.broadcast %6 : vector<8x1xf32> to vector<8x128xf32>
    %8 = arith.addf %5, %7 : vector<8x128xf32>
    %c0_6 = arith.constant 0 : index
    %c0_7 = arith.constant 0 : index
    %9 = vector.load %arg4[%c0_6, %c0_7] : memref<1x128xf32, #tpu.memory_space<vmem>>, vector<1x128xf32>
    %10 = vector.broadcast %9 : vector<1x128xf32> to vector<8x128xf32>
    %11 = arith.addf %8, %10 : vector<8x128xf32>
    %cst_8 = arith.constant 0.000000e+00 : f32
    %12 = vector.broadcast %cst_8 : f32 to vector<8x128xf32>
    %13 = arith.minimumf %11, %12 : vector<8x128xf32>
    %14 = math.exp %13 : vector<8x128xf32>
    %c0_9 = arith.constant 0 : index
    %c0_10 = arith.constant 0 : index
    %15 = vector.load %arg5[%c0_9, %c0_10] : memref<1x128xf32, #tpu.memory_space<vmem>>, vector<1x128xf32>
    %16 = vector.broadcast %15 : vector<1x128xf32> to vector<8x128xf32>
    %17 = arith.mulf %14, %16 : vector<8x128xf32>
    %c0_11 = arith.constant 0 : index
    %c0_12 = arith.constant 0 : index
    %18 = vector.load %arg8[%c0_11, %c0_12] : memref<8x128xf32, #tpu.memory_space<vmem>>, vector<8x128xf32>
    %19 = arith.addf %18, %17 : vector<8x128xf32>
    %c0_13 = arith.constant 0 : index
    %c0_14 = arith.constant 0 : index
    %20 = vector.load %arg8[%c0_13, %c0_14] : memref<8x128xf32, #tpu.memory_space<vmem>>, vector<8x128xf32>
    tpu.vector_store %arg8[%c0_13, %c0_14], %19 {strides = array<i32>} : memref<8x128xf32, #tpu.memory_space<vmem>>, vector<8x128xf32>,
    %c0_i32_15 = arith.constant 0 : i32
    %21 = arith.cmpi eq, %arg1, %c0_i32_15 : i32
    %22 = arith.extui %21 : i1 to i32
    %c0_i32_16 = arith.constant 0 : i32
    %23 = arith.cmpi ne, %22, %c0_i32_16 : i32
    scf.if %23 {
      %c0_17 = arith.constant 0 : index
      %c0_18 = arith.constant 0 : index
      %24 = vector.load %arg8[%c0_17, %c0_18] : memref<8x128xf32, #tpu.memory_space<vmem>>, vector<8x128xf32>
      %cst_19 = arith.constant dense<0.000000e+00> : vector<8xf32>
      %25 = vector.multi_reduction <add>, %24, %cst_19 [1] : vector<8x128xf32> to vector<8xf32>
      %26 = vector.shape_cast %25 : vector<8xf32> to vector<8x1xf32>
      %c0_20 = arith.constant 0 : index
      %c0_21 = arith.constant 0 : index
      %27 = vector.load %arg7[%c0_20, %c0_21] : memref<8x1xf32, #tpu.memory_space<vmem>>, vector<8x1xf32>
      tpu.vector_store %arg7[%c0_20, %c0_21], %26 {strides = array<i32>} : memref<8x1xf32, #tpu.memory_space<vmem>>, vector<8x1xf32>,
    } else {
    }
    return
  }
  func.func @transform_0(%arg0: i32, %arg1: i32) -> (i32, i32) {
    %c0_i32 = arith.constant 0 : i32
    %c0_i32_0 = arith.constant 0 : i32
    return %arg0, %c0_i32 : i32, i32
  }
  func.func @transform_1(%arg0: i32, %arg1: i32) -> (i32, i32) {
    %c0_i32 = arith.constant 0 : i32
    %c0_i32_0 = arith.constant 0 : i32
    return %c0_i32, %arg1 : i32, i32
  }
  func.func @transform_2(%arg0: i32, %arg1: i32) -> (i32, i32) {
    %c0_i32 = arith.constant 0 : i32
    %c0_i32_0 = arith.constant 0 : i32
    return %c0_i32, %arg1 : i32, i32
  }
  func.func @transform_3(%arg0: i32, %arg1: i32) -> (i32, i32) {
    %c0_i32 = arith.constant 0 : i32
    %c0_i32_0 = arith.constant 0 : i32
    return %c0_i32, %arg1 : i32, i32
  }
  func.func @transform_4(%arg0: i32, %arg1: i32) -> (i32, i32) {
    %c0_i32 = arith.constant 0 : i32
    %c0_i32_0 = arith.constant 0 : i32
    return %arg0, %c0_i32 : i32, i32
  }
  func.func @transform_5(%arg0: i32, %arg1: i32) -> (i32, i32) {
    %c0_i32 = arith.constant 0 : i32
    %c0_i32_0 = arith.constant 0 : i32
    return %arg0, %c0_i32 : i32, i32
  }
}

</mosaic_0001>

<bundles_post_ra>
// kernel: tpu_custom_call.1
= control target key start
LH: loop header
LB: loop body
LE: loop exit
PB: predicated region body
PF: predicated region fallthrough
CT: control target
= control target key end

     0   :  { %10 = vsyncpa [#allocation4], 0  ;;  %s141_s21 = smov [#allocation3]   ;;  %s142_s23 = smov 128   ;;  %s193_s0 = inlined_call_operand.vmem [shape: f32[8,32], index: 0, kind: input, shape index: {}]   ;;  %s194_s1 = inlined_call_operand.hbm [shape: f32[32,128], index: 1, kind: input, shape index: {}]   ;;  %s195_s2 = inlined_call_operand.vmem [shape: f32[1,128], index: 2, kind: input, shape index: {}]   ;;  %s196_s3 = inlined_call_operand.vmem [shape: f32[1,128], index: 3, kind: input, shape index: {}]   ;;  %s197_s4 = inlined_call_operand.vmem [shape: f32[8,1], index: 4, kind: input, shape index: {}]   ;;  %s198_s5 = inlined_call_operand.vmem [shape: f32[8,1], index: 5, kind: output, shape index: {}]  }
   0x1   :  { %s17_s20 = sshll.u32 %s194_s1, 4  ;;  %s19_s22 = sshll.u32 %s141_s21, 4  ;;  %s18_s20 = int_to_ptr.hbm [resolvable:$true] %s17_s20  ;;  %s20_s22 = int_to_ptr.vmem [resolvable:$true] %s19_s22 }
   0x2   :  { %s143_s24 = smov 8  }
   0x3   :  { %25 = dma.hbm_to_vmem [thread:$0]  %s18_s20, 512, %s20_s22, [#allocation4], %s142_s23, %s142_s23, %s143_s24  }
   0x4   :  { %139 = dma.done.wait [#allocation4], 512  }
   0x5   :  { %140 = vsyncadd [#allocation4], 4294966784  ;;  %v144_v0 = vmov 0   ;;  %v45_v1 = vld [vmem:[#allocation3 + $0x18] sm:$0xff]  ;;  %v44_v2 = vld [vmem:[#allocation3 + $0x10] sm:$0xff]  ;;  %vm52_vm0 = vcmask 261120  }
   0x6   :  { %110 = vset.pattern.permute.xlu0 %v144_v0  ;;  %68 = vmatpush.msra.mxu0 %v45_v1  ;;  %v46_v3 = vld [vmem:[%s197_s4] sm:$0xff]  ;;  %v43_v4 = vld [vmem:[#allocation3 + $0x8] sm:$0xff]  ;;  %vm98_vm1 = vcmask 7168  }
   0x7   :  { %49 = vperm.xlu0 %110, %v46_v3   ;;  %v42_v5 = vld [vmem:[#allocation3] sm:$0xff] }
   0x8   :  { %69 = vmatpush.msra.mxu0 %v44_v2  ;;  %v41_v6 = vld [vmem:[%s193_s0] sm:$0xff] }
   0x9   :  { %v111_v8 = vld [vmem:[%s195_s2] ss:$0 sm:$0xff] }
   0xa   :  { %70 = vmatpush.msra.mxu0 %v43_v4  ;;  %v112_v14 = vld [vmem:[%s196_s3] ss:$0 sm:$0xff] }
   0xc   :  { %71 = vmatpush.msra.mxu0 %v42_v5 }
   0xd   :  { %105 = vmatmul.msk.f32.vlgmr.msra.gmra.mxu0 %vm52_vm0, %v41_v6 }
  0x79   :  { %v50_v7 = vpop.permute.xlu0 %49 }
  0x8a   :  { %v73_v9 = vpop.f32.mrf.mxu0 }
  0x8b   :  { %v74_v10 = vadd.f32 %v73_v9, %v50_v7 }
  0x8d   :  { %v80_v11 = vadd.f32 %v111_v8, %v74_v10 }
  0x8f   :  { %v81_v12 = vmin.f32 %v80_v11, 0.0 }
  0x91   :  { %v82_v13 = vmul.f32 1.442695, %v81_v12 }
  0x93   :  { %113 = vpow2.f32 %v82_v13 }
  0x99   :  { %v114_v15 = vpop.eup %113 }
  0x9a   :  { %v88_v16 = vmul.f32 %v114_v15, %v112_v14 }
  0x9c   :  { %96 = vadd.xlane.f32.xlu0 %v88_v16 }
 0x10f   :  { %v97_v17 = vpop.xlane.xlu0 %96 }
 0x110   :  { %99 = vst.msk [vmem:[%s198_s5] sm:$0xff] %vm98_vm1, %v97_v17 }
 0x111   :  { %104 = vsyncpa [#allocation4], 1 }

</bundles_post_ra>
